<compile_context>
chip_gen: v6e
topology: v6e:2x2x1
jax: 0.10.0
libtpu: 0.0.40
codegen_flags: <defaults>
</compile_context>

<pallas_src>
import jax
import jax.numpy as jnp
from jax.experimental import pallas as pl
from jax.experimental.pallas import tpu as pltpu


def mlp_kernel(x_ref, w1_ref, b1_ref, w2_ref, b2_ref, w3_ref, b3_ref, o_ref):
    # x_ref: (TB, 42) -- batch on sublanes, features on lanes.
    x = x_ref[...]

    # Layer 1: (TB, 42) @ (42, 57) on the MXU, f32 accumulation.
    h1 = jnp.dot(x, w1_ref[...], preferred_element_type=jnp.float32) + b1_ref[...]
    h1 = jnp.maximum(h1, 0.0)                                   # ReLU
    # Dropout(p=0.3): identity in eval mode.
    # TODO(synk): training-mode dropout would need pltpu.prng_seed/prng_random_bits masking.

    # Layer 2: (TB, 57) @ (57, 4) on the MXU.
    h2 = jnp.dot(h1, w2_ref[...], preferred_element_type=jnp.float32) + b2_ref[...]
    h2 = jnp.maximum(h2, 0.0)                                   # ReLU
    # Dropout(p=0.3): identity in eval mode.

    # Layer 3 (4 -> 1): weighted lane-sum on VPU/XLU instead of another set of
    # f32-emulated MXU pushes (K=4, N=1 would cost ~3*TB/8 pushes for nothing).
    out = jnp.sum(h2 * w3_ref[...], axis=1, keepdims=True) + b3_ref[...]  # (TB, 1)
    o_ref[...] = out.astype(o_ref.dtype)


def _round_up(n, m):
    return ((n + m - 1) // m) * m


def model4_forward(x, params, *, tb_max=2048):
    """x: (B, ...) flattened to (B, 42); returns logits (B, 1)."""
    B = x.shape[0]
    x2d = x.reshape(B, -1)                      # nn.Flatten(); bitcast for contiguous input
    assert x2d.shape[1] == 42, "Model4 expects 42 flattened input features"
    w1, b1, w2, b2, w3, b3 = params             # PyTorch layout: w (out, in), b (out,)

    # Tiny (few-KB) parameter reshapes only; the big activation tensor is never
    # transposed, padded, or sliced on HBM.
    w1t = w1.T                                  # (42, 57)
    w2t = w2.T                                  # (57, 4)
    b1r = b1.reshape(1, 57)
    b2r = b2.reshape(1, 4)
    w3r = w3.reshape(1, 4)
    b3r = b3.reshape(1, 1)

    # Batch tile: multiple of 8 sublanes, >=1024 rows when B is large, capped
    # at tb_max so VMEM stays small; for B > 1 tile the grid has several tiles
    # (v7x megacore split + pipelining).  Ragged last tile handled by Pallas.
    TB = min(tb_max, max(1024, _round_up(pl.cdiv(B, 8), 128)))
    TB = max(8, min(TB, _round_up(B, 8)))
    grid = (pl.cdiv(B, TB),)

    flops = 2 * B * (42 * 57 + 57 * 4 + 4 * 1)
    bytes_accessed = 4 * (B * 42 + B * 1 + 42 * 57 + 57 + 57 * 4 + 4 + 4 + 1)

    const = lambda i: (0, 0)                    # params stay VMEM resident

    out = pl.pallas_call(
        mlp_kernel,
        out_shape=jax.ShapeDtypeStruct((B, 1), jnp.float32),
        grid=grid,
        in_specs=[
            pl.BlockSpec((TB, 42), lambda i: (i, 0)),   # x tile, pipelined
            pl.BlockSpec((42, 57), const),              # W1^T
            pl.BlockSpec((1, 57), const),               # b1
            pl.BlockSpec((57, 4), const),               # W2^T
            pl.BlockSpec((1, 4), const),                # b2
            pl.BlockSpec((1, 4), const),                # W3 (row)
            pl.BlockSpec((1, 1), const),                # b3
        ],
        out_specs=pl.BlockSpec((TB, 1), lambda i: (i, 0)),
        compiler_params=pltpu.CompilerParams(
            dimension_semantics=("parallel",),          # v7x: split tiles across 2 TCs
            vmem_limit_bytes=32 * 1024 * 1024,          # headroom incl. v5e 16 MiB default
        ),
        cost_estimate=pl.CostEstimate(
            flops=flops, transcendentals=0, bytes_accessed=bytes_accessed),
    )(x2d, w1t, b1r, w2t, b2r, w3r, b3r)

    return out                                  # (B, 1)


def init_params(key):
    """Deterministic PyTorch-like init. Weights (out, in), biases (out,)."""
    dims = [(42, 57), (57, 4), (4, 1)]
    params = []
    for fan_in, fan_out in dims:
        key, kw, kb = jax.random.split(key, 3)
        bound = 1.0 / jnp.sqrt(jnp.float32(fan_in))
        w = jax.random.uniform(kw, (fan_out, fan_in), jnp.float32, -bound, bound)
        b = jax.random.uniform(kb, (fan_out,), jnp.float32, -bound, bound)
        params += [w, b]
    return tuple(params)


if __name__ == "__main__":
    key = jax.random.PRNGKey(0)
    kp, kx = jax.random.split(key)
    params = init_params(kp)

    # Small example input: batch=8, features arranged as (6, 7) so Flatten -> 42.
    x = jax.random.normal(kx, (8, 6, 7), dtype=jnp.float32)

    logits = model4_forward(x, params)
    jax.block_until_ready(logits)

    # Pure-JAX reference (same eval-mode semantics, PyTorch (out, in) weights).
    w1, b1, w2, b2, w3, b3 = params
    xr = x.reshape(8, -1)
    ref = jnp.maximum(xr @ w1.T + b1, 0.0)
    ref = jnp.maximum(ref @ w2.T + b2, 0.0)
    ref = ref @ w3.T + b3

    assert logits.shape == (8, 1)
    assert jnp.allclose(logits, ref, atol=1e-5, rtol=1e-5)

    print("KERNEL_OK")
</pallas_src>

<mosaic_0001>
module attributes {stable_mosaic.version = 11 : i64} {
  func.func @mlp_kernel(%arg0: i32, %arg1: memref<8x42xf32, #tpu.memory_space<vmem>>, %arg2: memref<42x57xf32, #tpu.memory_space<vmem>>, %arg3: memref<1x57xf32, #tpu.memory_space<vmem>>, %arg4: memref<57x4xf32, #tpu.memory_space<vmem>>, %arg5: memref<1x4xf32, #tpu.memory_space<vmem>>, %arg6: memref<1x4xf32, #tpu.memory_space<vmem>>, %arg7: memref<1x1xf32, #tpu.memory_space<vmem>>, %arg8: memref<8x1xf32, #tpu.memory_space<vmem>>) attributes {dimension_semantics = [#tpu.dimension_semantics<parallel>], iteration_bounds = array<i64: 1>, scalar_prefetch = 0 : i64, scratch_operands = 0 : i64, tpu.core_type = #tpu.core_type<tc>, window_params = [{transform_indices = @transform_0, window_bounds = array<i64: 8, 42>}, {pipeline_mode = #tpu.pipeline_mode<synchronous>, transform_indices = @transform_1, window_bounds = array<i64: 42, 57>}, {pipeline_mode = #tpu.pipeline_mode<synchronous>, transform_indices = @transform_2, window_bounds = array<i64: 1, 57>}, {pipeline_mode = #tpu.pipeline_mode<synchronous>, transform_indices = @transform_3, window_bounds = array<i64: 57, 4>}, {pipeline_mode = #tpu.pipeline_mode<synchronous>, transform_indices = @transform_4, window_bounds = array<i64: 1, 4>}, {pipeline_mode = #tpu.pipeline_mode<synchronous>, transform_indices = @transform_5, window_bounds = array<i64: 1, 4>}, {pipeline_mode = #tpu.pipeline_mode<synchronous>, transform_indices = @transform_6, window_bounds = array<i64: 1, 1>}, {transform_indices = @transform_7, window_bounds = array<i64: 8, 1>}]} {
    %c0 = arith.constant 0 : index
    %c0_0 = arith.constant 0 : index
    %0 = vector.load %arg1[%c0, %c0_0] : memref<8x42xf32, #tpu.memory_space<vmem>>, vector<8x42xf32>
    %c0_1 = arith.constant 0 : index
    %c0_2 = arith.constant 0 : index
    %1 = vector.load %arg2[%c0_1, %c0_2] : memref<42x57xf32, #tpu.memory_space<vmem>>, vector<42x57xf32>
    %cst = arith.constant dense<0.000000e+00> : vector<8x57xf32>
    %2 = tpu.matmul %0, %1, %cst {dimension_numbers = #tpu.dot_dimension_numbers<[1], [0], [0], [1], [0, 0, 1, 1], [], []>} : vector<8x42xf32>, vector<42x57xf32>, vector<8x57xf32> -> vector<8x57xf32>
    %c0_3 = arith.constant 0 : index
    %c0_4 = arith.constant 0 : index
    %3 = vector.load %arg3[%c0_3, %c0_4] : memref<1x57xf32, #tpu.memory_space<vmem>>, vector<1x57xf32>
    %4 = vector.broadcast %3 : vector<1x57xf32> to vector<8x57xf32>
    %5 = arith.addf %2, %4 : vector<8x57xf32>
    %cst_5 = arith.constant 0.000000e+00 : f32
    %6 = vector.broadcast %cst_5 : f32 to vector<8x57xf32>
    %7 = arith.maximumf %5, %6 : vector<8x57xf32>
    %c0_6 = arith.constant 0 : index
    %c0_7 = arith.constant 0 : index
    %8 = vector.load %arg4[%c0_6, %c0_7] : memref<57x4xf32, #tpu.memory_space<vmem>>, vector<57x4xf32>
    %cst_8 = arith.constant dense<0.000000e+00> : vector<8x4xf32>
    %9 = tpu.matmul %7, %8, %cst_8 {dimension_numbers = #tpu.dot_dimension_numbers<[1], [0], [0], [1], [0, 0, 1, 1], [], []>} : vector<8x57xf32>, vector<57x4xf32>, vector<8x4xf32> -> vector<8x4xf32>
    %c0_9 = arith.constant 0 : index
    %c0_10 = arith.constant 0 : index
    %10 = vector.load %arg5[%c0_9, %c0_10] : memref<1x4xf32, #tpu.memory_space<vmem>>, vector<1x4xf32>
    %11 = vector.broadcast %10 : vector<1x4xf32> to vector<8x4xf32>
    %12 = arith.addf %9, %11 : vector<8x4xf32>
    %cst_11 = arith.constant 0.000000e+00 : f32
    %13 = vector.broadcast %cst_11 : f32 to vector<8x4xf32>
    %14 = arith.maximumf %12, %13 : vector<8x4xf32>
    %c0_12 = arith.constant 0 : index
    %c0_13 = arith.constant 0 : index
    %15 = vector.load %arg6[%c0_12, %c0_13] : memref<1x4xf32, #tpu.memory_space<vmem>>, vector<1x4xf32>
    %16 = vector.broadcast %15 : vector<1x4xf32> to vector<8x4xf32>
    %17 = arith.mulf %14, %16 : vector<8x4xf32>
    %cst_14 = arith.constant dense<0.000000e+00> : vector<8xf32>
    %18 = vector.multi_reduction <add>, %17, %cst_14 [1] : vector<8x4xf32> to vector<8xf32>
    %19 = vector.shape_cast %18 : vector<8xf32> to vector<8x1xf32>
    %c0_15 = arith.constant 0 : index
    %c0_16 = arith.constant 0 : index
    %20 = vector.load %arg7[%c0_15, %c0_16] : memref<1x1xf32, #tpu.memory_space<vmem>>, vector<1x1xf32>
    %21 = vector.broadcast %20 : vector<1x1xf32> to vector<8x1xf32>
    %22 = arith.addf %19, %21 : vector<8x1xf32>
    %c0_17 = arith.constant 0 : index
    %c0_18 = arith.constant 0 : index
    %23 = vector.load %arg8[%c0_17, %c0_18] : memref<8x1xf32, #tpu.memory_space<vmem>>, vector<8x1xf32>
    tpu.vector_store %arg8[%c0_17, %c0_18], %22 {strides = array<i32>} : memref<8x1xf32, #tpu.memory_space<vmem>>, vector<8x1xf32>,
    return
  }
  func.func @transform_0(%arg0: i32) -> (i32, i32) {
    %c0_i32 = arith.constant 0 : i32
    %c0_i32_0 = arith.constant 0 : i32
    return %arg0, %c0_i32 : i32, i32
  }
  func.func @transform_1(%arg0: i32) -> (i32, i32) {
    %c0_i32 = arith.constant 0 : i32
    %c0_i32_0 = arith.constant 0 : i32
    %c0_i32_1 = arith.constant 0 : i32
    return %c0_i32, %c0_i32_0 : i32, i32
  }
  func.func @transform_2(%arg0: i32) -> (i32, i32) {
    %c0_i32 = arith.constant 0 : i32
    %c0_i32_0 = arith.constant 0 : i32
    %c0_i32_1 = arith.constant 0 : i32
    return %c0_i32, %c0_i32_0 : i32, i32
  }
  func.func @transform_3(%arg0: i32) -> (i32, i32) {
    %c0_i32 = arith.constant 0 : i32
    %c0_i32_0 = arith.constant 0 : i32
    %c0_i32_1 = arith.constant 0 : i32
    return %c0_i32, %c0_i32_0 : i32, i32
  }
  func.func @transform_4(%arg0: i32) -> (i32, i32) {
    %c0_i32 = arith.constant 0 : i32
    %c0_i32_0 = arith.constant 0 : i32
    %c0_i32_1 = arith.constant 0 : i32
    return %c0_i32, %c0_i32_0 : i32, i32
  }
  func.func @transform_5(%arg0: i32) -> (i32, i32) {
    %c0_i32 = arith.constant 0 : i32
    %c0_i32_0 = arith.constant 0 : i32
    %c0_i32_1 = arith.constant 0 : i32
    return %c0_i32, %c0_i32_0 : i32, i32
  }
  func.func @transform_6(%arg0: i32) -> (i32, i32) {
    %c0_i32 = arith.constant 0 : i32
    %c0_i32_0 = arith.constant 0 : i32
    %c0_i32_1 = arith.constant 0 : i32
    return %c0_i32, %c0_i32_0 : i32, i32
  }
  func.func @transform_7(%arg0: i32) -> (i32, i32) {
    %c0_i32 = arith.constant 0 : i32
    %c0_i32_0 = arith.constant 0 : i32
    return %arg0, %c0_i32 : i32, i32
  }
}

</mosaic_0001>

<bundles_post_ra>
// kernel: tpu_custom_call.1
= control target key start
LH: loop header
LB: loop body
LE: loop exit
PB: predicated region body
PF: predicated region fallthrough
CT: control target
= control target key end

     0   :  { %vm46_vm0 = vcmask 1041408   ;;  %v301_v0 = vmov 0.0   ;;  %vm302_vm1 = vmmov 0   ;;  %vm140_vm2 = vcmask 1040384   ;;  %s403_s1 = inlined_call_operand.vmem [shape: f32[42,57], index: 1, kind: input, shape index: {}]   ;;  %s404_s3 = inlined_call_operand.vmem [shape: f32[57,4], index: 3, kind: input, shape index: {}]   ;;  %s405_s0 = inlined_call_operand.vmem [shape: f32[8,42], index: 0, kind: input, shape index: {}]   ;;  %s406_s2 = inlined_call_operand.vmem [shape: f32[1,57], index: 2, kind: input, shape index: {}]   ;;  %s407_s6 = inlined_call_operand.<no memory space> [shape: f32[1,1], index: 6, kind: input, shape index: {}]   ;;  %s408_s4 = inlined_call_operand.vmem [shape: f32[1,4], index: 4, kind: input, shape index: {}]   ;;  %s409_s5 = inlined_call_operand.vmem [shape: f32[1,4], index: 5, kind: input, shape index: {}]   ;;  %s410_s7 = inlined_call_operand.vmem [shape: f32[8,1], index: 7, kind: output, shape index: {}]  }
   0x1   :  { %265 = vmatprep.subr.mxu0 %v301_v0  ;;  %v34_v1 = vld [vmem:[%s403_s1 + $0x28] sm:$0x3]  ;;  %v33_v2 = vld [vmem:[%s403_s1 + $0x20] sm:$0xff]  ;;  %277 = vmatprep.mubr.msk.f32.mxu0 %vm302_vm1, %v301_v0  ;;  %v32_v3 = vld [vmem:[%s403_s1 + $0x18] sm:$0xff]  ;;  %vm42_vm3 = vcmask 343040   ;;  %vm136_vm4 = vcmask 465920   ;;  %v12_v21 = vstv %s407_s6 }
   0x2   :  { %266 = vmatpush3.msk.msra.mxu0 %vm46_vm0, %v34_v1  ;;  %280 = vmatprep.subr.mxu1 %v301_v0  ;;  %v128_v4 = vld [vmem:[%s404_s3 + $0x38] sm:$0x1]  ;;  %v127_v5 = vld [vmem:[%s404_s3 + $0x30] sm:$0xff]  ;;  %v126_v7 = vld [vmem:[%s404_s3 + $0x28] sm:$0xff]  ;;  %13 = vst [vmem:[#allocation2] sm:$0x1] %v12_v21 }
   0x3   :  { %267 = vmatprep.subr.mxu0 %v301_v0  ;;  %296 = vmatprep.mubr.msk.f32.mxu1 %vm302_vm1, %v301_v0  ;;  %v31_v6 = vld [vmem:[%s403_s1 + $0x10] sm:$0xff]  ;;  %v30_v8 = vld [vmem:[%s403_s1 + $0x8] sm:$0xff]  ;;  %v125_v9 = vld [vmem:[%s404_s3 + $0x20] sm:$0xff]  ;;  %vm223_vm5 = vcmask 31744   ;;  %vm235_vm6 = vcmask 7168  }
   0x4   :  { %268 = vmatpush3.msra.mxu0 %v33_v2  ;;  %281 = vmatpush3.msk.msra.mxu1 %vm140_vm2, %v128_v4  ;;  %v29_v10 = vld [vmem:[%s403_s1] sm:$0xff]  ;;  %v124_v11 = vld [vmem:[%s404_s3 + $0x18] sm:$0xff]  ;;  %v123_v13 = vld [vmem:[%s404_s3 + $0x10] sm:$0xff] }
   0x5   :  { %269 = vmatprep.subr.mxu0 %v301_v0  ;;  %282 = vmatprep.subr.mxu1 %v301_v0  ;;  %v28_v12 = vld [vmem:[%s405_s0] sm:$0xff]  ;;  %v122_v14 = vld [vmem:[%s404_s3 + $0x8] sm:$0xff] }
   0x6   :  { %270 = vmatpush3.msra.mxu0 %v32_v3  ;;  %283 = vmatpush3.msra.mxu1 %v127_v5  ;;  %v121_v15 = vld [vmem:[%s404_s3] sm:$0xff] }
   0x7   :  { %271 = vmatprep.subr.mxu0 %v301_v0  ;;  %284 = vmatprep.subr.mxu1 %v301_v0  ;;  %v241_v16 = vld [vmem:[%s406_s2] ss:$0 sm:$0xff] }
   0x8   :  { %272 = vmatpush3.msra.mxu0 %v31_v6  ;;  %285 = vmatpush3.msra.mxu1 %v126_v7  ;;  %v244_v22 = vld [vmem:[%s408_s4] ss:$0 sm:$0xff] }
   0x9   :  { %273 = vmatprep.subr.mxu0 %v301_v0  ;;  %286 = vmatprep.subr.mxu1 %v301_v0  ;;  %v247_v26 = vld [vmem:[%s409_s5] ss:$0 sm:$0xff] }
   0xa   :  { %274 = vmatpush3.msra.mxu0 %v30_v8  ;;  %287 = vmatpush3.msra.mxu1 %v125_v9  ;;  %v248_v30 = vld [vmem:[#allocation2] ss:$0 sm:$0xff] }
   0xb   :  { %275 = vmatprep.subr.mxu0 %v301_v0  ;;  %288 = vmatprep.subr.mxu1 %v301_v0 }
   0xc   :  { %276 = vmatpush3.msra.mxu0 %v29_v10  ;;  %289 = vmatpush3.msra.mxu1 %v124_v11 }
   0xd   :  { %278 = vmatmul.mubr.msk.f32.vlgmr.msra.gmra.mxu0 %vm42_vm3, %v28_v12  ;;  %290 = vmatprep.subr.mxu1 %v301_v0 }
   0xe   :  { %291 = vmatpush3.msra.mxu1 %v123_v13 }
   0xf   :  { %292 = vmatprep.subr.mxu1 %v301_v0 }
  0x10   :  { %293 = vmatpush3.msra.mxu1 %v122_v14 }
  0x11   :  { %294 = vmatprep.subr.mxu1 %v301_v0 }
  0x12   :  { %295 = vmatpush3.msra.mxu1 %v121_v15 }
  0xcd   :  { %v116_v17 = vpop.f32.mrf.mxu0 }
  0xce   :  { %v117_v18 = vadd.f32 %v241_v16, %v116_v17 }
  0xcf   :  { %v279_v19 = vpop.f32.mrf.mxu0 }
  0xd0   :  { %v120_v20 = vmax.f32 %v117_v18, 0.0 }
  0xd2   :  { %297 = vmatmul.mubr.msk.f32.vlgmr.msra.gmra.mxu1 %vm136_vm4, %v120_v20 }
 0x192   :  { %v210_v23 = vpop.f32.mrf.mxu1 }
 0x193   :  { %v211_v24 = vadd.f32 %v244_v22, %v210_v23 }
 0x194   :  { %v298_v25 = vpop.f32.mrf.mxu1 }
 0x195   :  { %v214_v27 = vmax.f32 %v211_v24, 0.0 }
 0x197   :  { %v222_v28 = vmul.f32 %v247_v26, %v214_v27 }
 0x199   :  { %v224_v29 = vsel %vm223_vm5, %v222_v28, 0.0 }
 0x19a   :  { %225 = vadd.xlane.f32.xlu0 %v224_v29 }
 0x223   :  { %v226_v31 = vpop.xlane.xlu0 %225 }
 0x224   :  { %v234_v32 = vadd.f32 %v248_v30, %v226_v31 }
 0x226   :  { %236 = vst.msk [vmem:[%s410_s7] sm:$0xff] %vm235_vm6, %v234_v32 }

</bundles_post_ra>
